<compile_context>
chip_gen: v7x
topology: tpu7x:2x2x1
jax: 0.10.0
libtpu: 0.0.40
codegen_flags: <defaults>
</compile_context>

<pallas_src>
from functools import partial

import jax
import jax.numpy as jnp
from jax.experimental import pallas as pl
from jax.experimental.pallas import tpu as pltpu


# ----------------------------------------------------------------------------
# Kernel body (shared by both layout paths)
# ----------------------------------------------------------------------------
def _conv1x1_bn_act_kernel(x_ref, w_ref, b_ref, o_ref, *, apply_relu):
    # x_ref: (C_in, T)  w_ref: (C_out, C_in)  b_ref: (C_out, 1)  o_ref: (C_out, T)
    y = jnp.dot(w_ref[...], x_ref[...], preferred_element_type=jnp.float32)
    y = y + b_ref[...]                      # folded conv-bias + BN affine
    if apply_relu:
        y = jnp.maximum(y, 0.0)
    o_ref[...] = y.astype(o_ref.dtype)


# ----------------------------------------------------------------------------
# Tile sizing helpers (generation-aware VMEM budget)
# ----------------------------------------------------------------------------
def _vmem_capacity_bytes():
    try:
        return int(pltpu.get_tpu_info().vmem_capacity_bytes)
    except Exception:
        return 64 << 20          # conservative fallback (v7x per-core VMEM)


def _round_up(x, m):
    return ((x + m - 1) // m) * m


def _pick_col_tile(cols, c_in, c_out, itemsize):
    """Widest lane-dense column tile that fits a double-buffered VMEM budget."""
    vmem_cap = _vmem_capacity_bytes()
    budget = min(vmem_cap // 4, 16 << 20)          # activation+output buffers
    per_col = max((c_in + c_out) * itemsize * 2, 1)  # x2 for double-buffering
    max_tile = max(512, (budget // per_col) // 512 * 512)
    tile = min(max_tile, 8192)                     # keep DMAs pipelined
    if cols <= tile:
        return cols                                # tiny problem: full extent
    if pl.cdiv(cols, tile) < 8:                    # keep >=8 steps (2 TCs + pipeline)
        tile = min(tile, max(512, _round_up(-(-cols // 8), 512)))
    return tile


# ----------------------------------------------------------------------------
# Wrapper
# ----------------------------------------------------------------------------
def myconv1d_forward(x, conv_w, conv_b, bn_gamma, bn_beta, bn_mean, bn_var,
                     *, eps=1e-5, if_bn=True, apply_relu=True):
    """x: (B, C_in, N) NCW like PyTorch Conv1d.  conv_w: (C_out, C_in, 1)."""
    B, C_in, N = x.shape
    C_out = conv_w.shape[0]
    assert conv_w.shape[2] == 1, "only kernel_size=1 is supported"

    # ---- fold Conv1d(k=1) + eval-mode BatchNorm1d into one affine map (f32) --
    wc = conv_w[:, :, 0].astype(jnp.float32)                 # (C_out, C_in)
    if if_bn:
        s = (bn_gamma / jnp.sqrt(bn_var + eps)).astype(jnp.float32)
        w_eff = s[:, None] * wc
        b_eff = s * conv_b.astype(jnp.float32) + bn_beta - s * bn_mean
    else:
        w_eff = wc
        b_eff = conv_b.astype(jnp.float32)
    w_eff = w_eff.astype(x.dtype)                            # bf16 weights if x bf16
    b_eff = b_eff.astype(jnp.float32).reshape(C_out, 1)

    kernel = partial(_conv1x1_bn_act_kernel, apply_relu=apply_relu)
    itemsize = jnp.dtype(x.dtype).itemsize
    vmem_limit = min(_vmem_capacity_bytes(), 128 << 20) // 2

    if N >= 128:
        # ---- NCW path: no wrapper transposes, grid over (batch, N-tiles) -----
        tile_n = _pick_col_tile(N, C_in, C_out, itemsize)
        grid = (B, pl.cdiv(N, tile_n))
        cost = pl.CostEstimate(
            flops=2 * B * C_out * C_in * N,
            transcendentals=0,
            bytes_accessed=itemsize * (B * C_in * N + B * C_out * N)
                           + 4 * (C_out * C_in + C_out))
        return pl.pallas_call(
            kernel,
            out_shape=jax.ShapeDtypeStruct((B, C_out, N), x.dtype),
            grid=grid,
            in_specs=[
                pl.BlockSpec((None, C_in, tile_n), lambda b, j: (b, 0, j)),
                pl.BlockSpec((C_out, C_in), lambda b, j: (0, 0)),
                pl.BlockSpec((C_out, 1), lambda b, j: (0, 0)),
            ],
            out_specs=pl.BlockSpec((None, C_out, tile_n), lambda b, j: (b, 0, j)),
            compiler_params=pltpu.CompilerParams(
                dimension_semantics=("parallel", "parallel"),
                vmem_limit_bytes=vmem_limit),
            cost_estimate=cost,
        )(x, w_eff, b_eff)

    # ---- small-N path: flatten to lane-dense (C_in, B*N) so stores are wide --
    cols = B * N
    x_flat = jnp.transpose(x, (1, 0, 2)).reshape(C_in, cols)
    tile = _pick_col_tile(cols, C_in, C_out, itemsize)
    grid = (pl.cdiv(cols, tile),)
    cost = pl.CostEstimate(
        flops=2 * C_out * C_in * cols,
        transcendentals=0,
        bytes_accessed=itemsize * (C_in * cols + C_out * cols)
                       + 4 * (C_out * C_in + C_out))
    out_flat = pl.pallas_call(
        kernel,
        out_shape=jax.ShapeDtypeStruct((C_out, cols), x.dtype),
        grid=grid,
        in_specs=[
            pl.BlockSpec((C_in, tile), lambda j: (0, j)),      # activation columns
            pl.BlockSpec((C_out, C_in), lambda j: (0, 0)),     # folded weight (resident)
            pl.BlockSpec((C_out, 1), lambda j: (0, 0)),        # folded bias   (resident)
        ],
        out_specs=pl.BlockSpec((C_out, tile), lambda j: (0, j)),
        compiler_params=pltpu.CompilerParams(
            dimension_semantics=("parallel",),
            vmem_limit_bytes=vmem_limit),
        cost_estimate=cost,
    )(x_flat, w_eff, b_eff)
    return jnp.transpose(out_flat.reshape(C_out, B, N), (1, 0, 2))


# ----------------------------------------------------------------------------
# Plain-JAX reference (mirrors the PyTorch forward, eval-mode BN)
# ----------------------------------------------------------------------------
def myconv1d_reference(x, conv_w, conv_b, bn_gamma, bn_beta, bn_mean, bn_var,
                       *, eps=1e-5, if_bn=True, apply_relu=True):
    out = jnp.einsum('oi,bin->bon', conv_w[:, :, 0], x) + conv_b[None, :, None]
    if if_bn:
        out = (out - bn_mean[None, :, None]) / jnp.sqrt(bn_var[None, :, None] + eps)
        out = out * bn_gamma[None, :, None] + bn_beta[None, :, None]
    if apply_relu:
        out = jnp.maximum(out, 0.0)
    return out


def init_params(key, in_channels, out_channels):
    k = jax.random.split(key, 6)
    conv_w = jax.random.normal(k[0], (out_channels, in_channels, 1), jnp.float32) * 0.2
    conv_b = jax.random.normal(k[1], (out_channels,), jnp.float32) * 0.1
    bn_gamma = 1.0 + 0.1 * jax.random.normal(k[2], (out_channels,), jnp.float32)
    bn_beta = 0.1 * jax.random.normal(k[3], (out_channels,), jnp.float32)
    bn_mean = 0.1 * jax.random.normal(k[4], (out_channels,), jnp.float32)
    bn_var = 0.5 + jnp.abs(jax.random.normal(k[5], (out_channels,), jnp.float32))
    return conv_w, conv_b, bn_gamma, bn_beta, bn_mean, bn_var


if __name__ == "__main__":
    B, C_in, C_out = 2, 4, 8

    key = jax.random.PRNGKey(0)
    kx, kx2, kp = jax.random.split(key, 3)
    params = init_params(kp, C_in, C_out)

    # Small N -> exercises the flattened lane-dense path.
    N_small = 16
    x_small = jax.random.normal(kx, (B, C_in, N_small), jnp.float32)
    out_small = jax.block_until_ready(myconv1d_forward(x_small, *params))
    ref_small = myconv1d_reference(x_small, *params)
    assert out_small.shape == (B, C_out, N_small)
    assert jnp.allclose(out_small, ref_small, atol=1e-4, rtol=1e-4), "small-N mismatch"

    # Larger N -> exercises the transpose-free NCW path.
    N_big = 256
    x_big = jax.random.normal(kx2, (B, C_in, N_big), jnp.float32)
    out_big = jax.block_until_ready(myconv1d_forward(x_big, *params))
    ref_big = myconv1d_reference(x_big, *params)
    assert out_big.shape == (B, C_out, N_big)
    assert jnp.allclose(out_big, ref_big, atol=1e-4, rtol=1e-4), "large-N mismatch"

    print("KERNEL_OK")
</pallas_src>

<mosaic_0001>
module attributes {stable_mosaic.version = 11 : i64} {
  func.func @_conv1x1_bn_act_kernel(%arg0: i32, %arg1: memref<4x32xf32, #tpu.memory_space<vmem>>, %arg2: memref<8x4xf32, #tpu.memory_space<vmem>>, %arg3: memref<8x1xf32, #tpu.memory_space<vmem>>, %arg4: memref<8x32xf32, #tpu.memory_space<vmem>>) attributes {dimension_semantics = [#tpu.dimension_semantics<parallel>], iteration_bounds = array<i64: 1>, scalar_prefetch = 0 : i64, scratch_operands = 0 : i64, tpu.core_type = #tpu.core_type<tc>, window_params = [{transform_indices = @transform_0, window_bounds = array<i64: 4, 32>}, {pipeline_mode = #tpu.pipeline_mode<synchronous>, transform_indices = @transform_1, window_bounds = array<i64: 8, 4>}, {pipeline_mode = #tpu.pipeline_mode<synchronous>, transform_indices = @transform_2, window_bounds = array<i64: 8, 1>}, {transform_indices = @transform_3, window_bounds = array<i64: 8, 32>}]} {
    %c0 = arith.constant 0 : index
    %c0_0 = arith.constant 0 : index
    %0 = vector.load %arg2[%c0, %c0_0] : memref<8x4xf32, #tpu.memory_space<vmem>>, vector<8x4xf32>
    %c0_1 = arith.constant 0 : index
    %c0_2 = arith.constant 0 : index
    %1 = vector.load %arg1[%c0_1, %c0_2] : memref<4x32xf32, #tpu.memory_space<vmem>>, vector<4x32xf32>
    %cst = arith.constant dense<0.000000e+00> : vector<8x32xf32>
    %2 = tpu.matmul %0, %1, %cst {dimension_numbers = #tpu.dot_dimension_numbers<[1], [0], [0], [1], [0, 0, 1, 1], [], []>} : vector<8x4xf32>, vector<4x32xf32>, vector<8x32xf32> -> vector<8x32xf32>
    %c0_3 = arith.constant 0 : index
    %c0_4 = arith.constant 0 : index
    %3 = vector.load %arg3[%c0_3, %c0_4] : memref<8x1xf32, #tpu.memory_space<vmem>>, vector<8x1xf32>
    %4 = vector.broadcast %3 : vector<8x1xf32> to vector<8x32xf32>
    %5 = arith.addf %2, %4 : vector<8x32xf32>
    %cst_5 = arith.constant 0.000000e+00 : f32
    %6 = vector.broadcast %cst_5 : f32 to vector<8x32xf32>
    %7 = arith.maximumf %5, %6 : vector<8x32xf32>
    %c0_6 = arith.constant 0 : index
    %c0_7 = arith.constant 0 : index
    %8 = vector.load %arg4[%c0_6, %c0_7] : memref<8x32xf32, #tpu.memory_space<vmem>>, vector<8x32xf32>
    tpu.vector_store %arg4[%c0_6, %c0_7], %7 {strides = array<i32>} : memref<8x32xf32, #tpu.memory_space<vmem>>, vector<8x32xf32>,
    return
  }
  func.func @transform_0(%arg0: i32) -> (i32, i32) {
    %c0_i32 = arith.constant 0 : i32
    %c0_i32_0 = arith.constant 0 : i32
    return %c0_i32, %arg0 : i32, i32
  }
  func.func @transform_1(%arg0: i32) -> (i32, i32) {
    %c0_i32 = arith.constant 0 : i32
    %c0_i32_0 = arith.constant 0 : i32
    %c0_i32_1 = arith.constant 0 : i32
    return %c0_i32, %c0_i32_0 : i32, i32
  }
  func.func @transform_2(%arg0: i32) -> (i32, i32) {
    %c0_i32 = arith.constant 0 : i32
    %c0_i32_0 = arith.constant 0 : i32
    %c0_i32_1 = arith.constant 0 : i32
    return %c0_i32, %c0_i32_0 : i32, i32
  }
  func.func @transform_3(%arg0: i32) -> (i32, i32) {
    %c0_i32 = arith.constant 0 : i32
    %c0_i32_0 = arith.constant 0 : i32
    return %c0_i32, %arg0 : i32, i32
  }
}

</mosaic_0001>

<bundles_post_ra>
// kernel: tpu_custom_call.1
= control target key start
LH: loop header
LB: loop body
LE: loop exit
PB: predicated region body
PF: predicated region fallthrough
CT: control target
= control target key end

     0   :  { %vm27_vm0 = vcmask 1043456   ;;  %v156_v2 = vmov 0.0   ;;  %vm157_vm1 = vmmov 0   ;;  %vm23_vm2 = vcmask 31744   ;;  %s201_s0 = inlined_call_operand.vmem [shape: f32[4,32], index: 0, kind: input, shape index: {}]   ;;  %s202_s1 = inlined_call_operand.vmem [shape: f32[8,4], index: 1, kind: input, shape index: {}]   ;;  %s203_s2 = inlined_call_operand.vmem [shape: f32[8,1], index: 2, kind: input, shape index: {}]   ;;  %s204_s3 = inlined_call_operand.hbm [shape: f32[8,32], index: 3, kind: output, shape index: {}]  }
   0x1   :  { %v16_v0 = vld [vmem:[%s201_s0] sm:$0xf]  ;;  %122 = vmatprep.subr.mxu0 %v156_v2  ;;  %124 = vmatprep.mubr.msk.f32.mxu0 %vm157_vm1, %v156_v2 }
   0x2   :  { %v15_v1 = vld [vmem:[%s202_s1] sm:$0xff] }
   0x3   :  { %v17_v3 = vld [vmem:[%s203_s2] sm:$0xff] }
   0x4   :  { %8 = vsyncpa [#allocation3], 0  ;;  %123 = vmatpush3.msk.msra.mxu0 %vm27_vm0, %v16_v0  ;;  %v158_v4 = vmov 0   ;;  %s159_s0 = smov [#allocation2]   ;;  %vm102_vm3 = vcmask 261120  }
   0x5   :  { %131 = vset.pattern.permute.xlu0 %v158_v4  ;;  %125 = vmatmul.mubr.msk.f32.vlgmr.msra.gmra.mrb[0].mxu0 %vm23_vm2, %v15_v1  ;;  %s110_s18 = sshll.u32 %s159_s0, 4  ;;  %s111_s18 = int_to_ptr.vmem [resolvable:$true] %s110_s18 }
   0x6   :  { %20 = vperm.xlu0 %131, %v17_v3   ;;  %s132_s1 = scalar_lea.vmem %s111_s18, 128  ;;  %p137_p1 = scmp.lt.s32.totalorder %s111_s18, %s111_s18 }
   0x7   :  { %p133_p0 = scmp.ne.s32.totalorder %s111_s18, %s132_s1  ;;  %p138_p2 = scmp.lt.s32.totalorder %s132_s1, %s132_s1 }
   0x9   :  { %p139_p3 = por %p138_p2, %p137_p1 }
   0xb   :  { %p140_p4 = pnand %p139_p3, %p133_p0 }
  0x85   :  { %v21_v5 = vpop.permute.xlu0 %20 }
  0xd8   :  { %v97_v6 = vpop.f32.mrb[0].mxu0 }
  0xd9   :  { %v98_v7 = vadd.f32 %v97_v6, %v21_v5  ;;  %v126_v8 = vpop.f32.mrb[1].mxu0 }
  0xdb   :  { %v101_v9 = vmax.f32 %v98_v7, 0.0 }
  0xdd   :  { %103 = vst.msk [vmem:[#allocation2] sm:$0xff] %vm102_vm3, %v101_v9 }
  0xde   :  { %143 = shalt.err (!%p140_p4)
}
  0xdf   :  { %s144_s20 = scalar_lea.hbm %s204_s3, 128 }
  0xe0   :  { %p145_p5 = scmp.ne.s32.totalorder %s204_s3, %s144_s20  ;;  %p148_p6 = scmp.lt.u32.totalorder %s144_s20, %s204_s3 }
  0xe2   :  { %p150_p7 = pnand %p148_p6, %p145_p5 }
  0xe4   :  { %153 = shalt.err (!%p150_p7)
}
  0xe5   :  { %113 = dma.vmem_to_hbm [thread:$0]  %s111_s18, 128, %s204_s3, [#allocation3]  }
  0xe6   :  { %154 = dma.done.wait [#allocation3], 128  }
  0xe7   :  { %155 = vsyncadd [#allocation3], 4294967168 }
  0xe8   :  { %117 = vsyncpa [#allocation3], 1 }

</bundles_post_ra>
